<compile_context>
chip_gen: v7x
topology: tpu7x:2x2x1
jax: 0.10.0
libtpu: 0.0.40
codegen_flags: <defaults>
</compile_context>

<pallas_src>
import functools

import jax
import jax.numpy as jnp
from jax import lax
from jax.experimental import pallas as pl
from jax.experimental.pallas import tpu as pltpu


def _lstm_decoder_kernel(xb_ref, h0_ref, c0_ref, whh_ref, wlin_ref, blin_ref,
                         out_ref, hn_ref, cn_ref, hs_sc):
    """Single-layer LSTM recurrence + hoisted Linear, fused.

    xb_ref  : (S, Bp, 4H) VMEM  precomputed x*W_ih + (b_ih + b_hh), gate order (i,f,o,g)
    h0/c0   : (Bp, H)     VMEM
    whh_ref : (H, 4H)     VMEM  (= weight_hh_l0.T, gate-reordered)
    wlin_ref: (1, 1, H)   VMEM  (= linear.weight)
    blin_ref: (1,)        SMEM  (= linear.bias)
    out_ref : (S, Bp, 1)  VMEM
    hn/cn   : (Bp, H)     VMEM
    hs_sc   : (S, Bp, H)  f32 scratch holding every h_t for the post-loop Linear.
    """
    S = xb_ref.shape[0]
    H = h0_ref.shape[1]

    def step(t, carry):
        h, c = carry
        # Single MXU matmul per step; input/bias contribution is precomputed.
        gates = xb_ref[t] + jnp.dot(h, whh_ref[...],
                                    preferred_element_type=jnp.float32)   # (Bp, 4H)

        # Gate order (i, f, o, g): one wide sigmoid over 3H lanes, one tanh.
        sig = jax.nn.sigmoid(gates[:, :3 * H])
        i_g = sig[:, 0 * H:1 * H]
        f_g = sig[:, 1 * H:2 * H]
        o_g = sig[:, 2 * H:3 * H]
        g_g = jnp.tanh(gates[:, 3 * H:])

        c_new = f_g * c + i_g * g_g
        h_new = o_g * jnp.tanh(c_new)

        hs_sc[t] = h_new                       # record lstm_out[t] (off the h->h chain)
        return h_new, c_new

    h_fin, c_fin = lax.fori_loop(0, S, step, (h0_ref[...], c0_ref[...]),
                                 unroll=True)
    hn_ref[...] = h_fin
    cn_ref[...] = c_fin

    # Hoisted Linear: single weighted-sum over H for all (S, Bp) positions.
    hs = hs_sc[...]                                            # (S, Bp, H)
    out_ref[...] = (jnp.sum(hs * wlin_ref[...], axis=-1, keepdims=True)
                    + blin_ref[0])                             # (S, Bp, 1)


@jax.jit
def lstm_decoder_forward(x_input, h0, c0, params):
    """x_input: (B, S) f32; h0, c0: (1, B, H) f32 (num_layers = 1)."""
    B, S = x_input.shape
    H = h0.shape[-1]
    Bp = ((B + 7) // 8) * 8            # pad batch to the f32 sublane multiple (8)

    # --- weight prep (plain JAX, traced once) -------------------------------
    # Reorder PyTorch gate blocks (i, f, g, o) -> (i, f, o, g).
    perm = jnp.concatenate([jnp.arange(0, 2 * H),
                            jnp.arange(3 * H, 4 * H),
                            jnp.arange(2 * H, 3 * H)])
    wih_r = params["weight_ih"][perm, 0]                       # (4H,)   input_size == 1
    whh_t = params["weight_hh"][perm].T                        # (H, 4H)
    bias = (params["bias_ih"] + params["bias_hh"])[perm]       # (4H,)

    # --- layout plumbing -----------------------------------------------------
    x_k = jnp.transpose(x_input, (1, 0))                       # (S, B)
    x_k = jnp.pad(x_k, ((0, 0), (0, Bp - B)))                  # (S, Bp)
    # Precomputed input projection + biases for all timesteps (outer product).
    xb = x_k[:, :, None] * wih_r[None, None, :] + bias[None, None, :]   # (S, Bp, 4H)

    h0_k = jnp.pad(h0[0], ((0, Bp - B), (0, 0)))               # (Bp, H)
    c0_k = jnp.pad(c0[0], ((0, Bp - B), (0, 0)))               # (Bp, H)

    wlin_k = params["linear_w"].reshape(1, 1, H)               # (1, 1, H)
    blin_k = params["linear_b"].reshape(1)                     # (1,)

    vmem = pl.BlockSpec(memory_space=pltpu.MemorySpace.VMEM)
    smem = pl.BlockSpec(memory_space=pltpu.MemorySpace.SMEM)

    out_k, hn_k, cn_k = pl.pallas_call(
        _lstm_decoder_kernel,
        out_shape=(
            jax.ShapeDtypeStruct((S, Bp, 1), jnp.float32),
            jax.ShapeDtypeStruct((Bp, H), jnp.float32),
            jax.ShapeDtypeStruct((Bp, H), jnp.float32),
        ),
        in_specs=[vmem, vmem, vmem, vmem, vmem, smem],
        out_specs=(vmem, vmem, vmem),
        scratch_shapes=[pltpu.VMEM((S, Bp, H), jnp.float32)],
    )(xb, h0_k, c0_k, whh_t, wlin_k, blin_k)

    output = jnp.transpose(out_k[:, :B, :], (1, 0, 2))         # (B, S, 1)
    h_n = hn_k[:B][None]                                       # (1, B, H)
    c_n = cn_k[:B][None]                                       # (1, B, H)
    return output, (h_n, c_n)


def _reference_forward(x_input, h0, c0, params):
    """Pure-JAX reference (mirrors torch.nn.LSTM + Linear) for validation."""
    wih, whh = params["weight_ih"], params["weight_hh"]
    bih, bhh = params["bias_ih"], params["bias_hh"]
    wlin, blin = params["linear_w"], params["linear_b"]
    x = x_input[:, :, None]                                    # (B, S, 1)

    def step(carry, x_t):
        h, c = carry
        gates = x_t @ wih.T + bih + h @ whh.T + bhh
        i, f, g, o = jnp.split(gates, 4, axis=-1)
        i, f, o = jax.nn.sigmoid(i), jax.nn.sigmoid(f), jax.nn.sigmoid(o)
        g = jnp.tanh(g)
        c = f * c + i * g
        h = o * jnp.tanh(c)
        return (h, c), h

    (h_n, c_n), hs = lax.scan(step, (h0[0], c0[0]),
                              jnp.transpose(x, (1, 0, 2)))
    lstm_out = jnp.transpose(hs, (1, 0, 2))                    # (B, S, H)
    out = lstm_out @ wlin.T + blin
    return out, (h_n[None], c_n[None])


def _init_params(key, input_size, hidden_size):
    ks = jax.random.split(key, 6)
    s = 1.0 / jnp.sqrt(hidden_size)
    return {
        "weight_ih": jax.random.uniform(ks[0], (4 * hidden_size, input_size),
                                        jnp.float32, -s, s),
        "weight_hh": jax.random.uniform(ks[1], (4 * hidden_size, hidden_size),
                                        jnp.float32, -s, s),
        "bias_ih": jax.random.uniform(ks[2], (4 * hidden_size,),
                                      jnp.float32, -s, s),
        "bias_hh": jax.random.uniform(ks[3], (4 * hidden_size,),
                                      jnp.float32, -s, s),
        "linear_w": jax.random.uniform(ks[4], (input_size, hidden_size),
                                       jnp.float32, -s, s),
        "linear_b": jax.random.uniform(ks[5], (input_size,),
                                       jnp.float32, -s, s),
    }


if __name__ == "__main__":
    B, S, H, INPUT_SIZE = 2, 8, 32, 1   # input_size=1 (x_input.unsqueeze(-1))

    key = jax.random.PRNGKey(0)
    k_x, k_h, k_c, k_p = jax.random.split(key, 4)

    x_input = jax.random.normal(k_x, (B, S), jnp.float32)
    h0 = jax.random.normal(k_h, (1, B, H), jnp.float32)
    c0 = jax.random.normal(k_c, (1, B, H), jnp.float32)
    params = _init_params(k_p, INPUT_SIZE, H)

    out, (h_n, c_n) = lstm_decoder_forward(x_input, h0, c0, params)
    jax.block_until_ready((out, h_n, c_n))

    out_ref, (h_ref, c_ref) = _reference_forward(x_input, h0, c0, params)
    assert out.shape == (B, S, INPUT_SIZE)
    assert h_n.shape == (1, B, H) and c_n.shape == (1, B, H)
    assert jnp.allclose(out, out_ref, atol=1e-5, rtol=1e-5)
    assert jnp.allclose(h_n, h_ref, atol=1e-5, rtol=1e-5)
    assert jnp.allclose(c_n, c_ref, atol=1e-5, rtol=1e-5)

    print("KERNEL_OK")
</pallas_src>

<mosaic_0001>
module attributes {stable_mosaic.version = 11 : i64} {
  func.func @_lstm_decoder_kernel(%arg0: memref<8x8x128xf32, #tpu.memory_space<vmem>>, %arg1: memref<8x32xf32, #tpu.memory_space<vmem>>, %arg2: memref<8x32xf32, #tpu.memory_space<vmem>>, %arg3: memref<32x128xf32, #tpu.memory_space<vmem>>, %arg4: memref<1x1x32xf32, #tpu.memory_space<vmem>>, %arg5: memref<1xf32, #tpu.memory_space<smem>>, %arg6: memref<8x8x1xf32, #tpu.memory_space<vmem>>, %arg7: memref<8x32xf32, #tpu.memory_space<vmem>>, %arg8: memref<8x32xf32, #tpu.memory_space<vmem>>, %arg9: memref<8x8x32xf32, #tpu.memory_space<vmem>>) attributes {dimension_semantics = [], scalar_prefetch = 0 : i64, scratch_operands = 1 : i64, tpu.core_type = #tpu.core_type<tc>} {
    %c0 = arith.constant 0 : index
    %c0_0 = arith.constant 0 : index
    %0 = vector.load %arg1[%c0, %c0_0] : memref<8x32xf32, #tpu.memory_space<vmem>>, vector<8x32xf32>
    %c0_1 = arith.constant 0 : index
    %c0_2 = arith.constant 0 : index
    %1 = vector.load %arg2[%c0_1, %c0_2] : memref<8x32xf32, #tpu.memory_space<vmem>>, vector<8x32xf32>
    %c0_i32 = arith.constant 0 : i32
    %2 = arith.index_cast %c0_i32 : i32 to index
    %c0_3 = arith.constant 0 : index
    %c0_4 = arith.constant 0 : index
    %3 = vector.load %arg0[%2, %c0_3, %c0_4] : memref<8x8x128xf32, #tpu.memory_space<vmem>>, vector<1x8x128xf32>
    %4 = vector.shape_cast %3 : vector<1x8x128xf32> to vector<8x128xf32>
    %c0_5 = arith.constant 0 : index
    %c0_6 = arith.constant 0 : index
    %5 = vector.load %arg3[%c0_5, %c0_6] : memref<32x128xf32, #tpu.memory_space<vmem>>, vector<32x128xf32>
    %cst = arith.constant dense<0.000000e+00> : vector<8x128xf32>
    %6 = tpu.matmul %0, %5, %cst {dimension_numbers = #tpu.dot_dimension_numbers<[1], [0], [0], [1], [0, 0, 1, 1], [], []>} : vector<8x32xf32>, vector<32x128xf32>, vector<8x128xf32> -> vector<8x128xf32>
    %7 = arith.addf %4, %6 : vector<8x128xf32>
    %8 = vector.extract_strided_slice %7 {offsets = [0, 0], sizes = [8, 96], strides = [1, 1]} : vector<8x128xf32> to vector<8x96xf32>
    %9 = arith.negf %8 : vector<8x96xf32>
    %10 = math.exp %9 : vector<8x96xf32>
    %cst_7 = arith.constant 1.000000e+00 : f32
    %11 = vector.broadcast %cst_7 : f32 to vector<8x96xf32>
    %12 = arith.addf %11, %10 : vector<8x96xf32>
    %13 = arith.divf %11, %12 : vector<8x96xf32>
    %14 = vector.extract_strided_slice %13 {offsets = [0, 0], sizes = [8, 32], strides = [1, 1]} : vector<8x96xf32> to vector<8x32xf32>
    %15 = vector.extract_strided_slice %13 {offsets = [0, 32], sizes = [8, 32], strides = [1, 1]} : vector<8x96xf32> to vector<8x32xf32>
    %16 = vector.extract_strided_slice %13 {offsets = [0, 64], sizes = [8, 32], strides = [1, 1]} : vector<8x96xf32> to vector<8x32xf32>
    %17 = vector.extract_strided_slice %7 {offsets = [0, 96], sizes = [8, 32], strides = [1, 1]} : vector<8x128xf32> to vector<8x32xf32>
    %18 = math.tanh %17 : vector<8x32xf32>
    %19 = arith.mulf %15, %1 : vector<8x32xf32>
    %20 = arith.mulf %14, %18 : vector<8x32xf32>
    %21 = arith.addf %19, %20 : vector<8x32xf32>
    %22 = math.tanh %21 : vector<8x32xf32>
    %23 = arith.mulf %16, %22 : vector<8x32xf32>
    %24 = arith.index_cast %c0_i32 : i32 to index
    %c0_8 = arith.constant 0 : index
    %c0_9 = arith.constant 0 : index
    %25 = vector.load %arg9[%24, %c0_8, %c0_9] : memref<8x8x32xf32, #tpu.memory_space<vmem>>, vector<1x8x32xf32>
    %26 = vector.shape_cast %25 : vector<1x8x32xf32> to vector<8x32xf32>
    %27 = vector.shape_cast %23 : vector<8x32xf32> to vector<1x8x32xf32>
    tpu.vector_store %arg9[%24, %c0_8, %c0_9], %27 {strides = array<i32>} : memref<8x8x32xf32, #tpu.memory_space<vmem>>, vector<1x8x32xf32>,
    %c1_i32 = arith.constant 1 : i32
    %28 = arith.index_cast %c1_i32 : i32 to index
    %c0_10 = arith.constant 0 : index
    %c0_11 = arith.constant 0 : index
    %29 = vector.load %arg0[%28, %c0_10, %c0_11] : memref<8x8x128xf32, #tpu.memory_space<vmem>>, vector<1x8x128xf32>
    %30 = vector.shape_cast %29 : vector<1x8x128xf32> to vector<8x128xf32>
    %c0_12 = arith.constant 0 : index
    %c0_13 = arith.constant 0 : index
    %31 = vector.load %arg3[%c0_12, %c0_13] : memref<32x128xf32, #tpu.memory_space<vmem>>, vector<32x128xf32>
    %cst_14 = arith.constant dense<0.000000e+00> : vector<8x128xf32>
    %32 = tpu.matmul %23, %31, %cst_14 {dimension_numbers = #tpu.dot_dimension_numbers<[1], [0], [0], [1], [0, 0, 1, 1], [], []>} : vector<8x32xf32>, vector<32x128xf32>, vector<8x128xf32> -> vector<8x128xf32>
    %33 = arith.addf %30, %32 : vector<8x128xf32>
    %34 = vector.extract_strided_slice %33 {offsets = [0, 0], sizes = [8, 96], strides = [1, 1]} : vector<8x128xf32> to vector<8x96xf32>
    %35 = arith.negf %34 : vector<8x96xf32>
    %36 = math.exp %35 : vector<8x96xf32>
    %cst_15 = arith.constant 1.000000e+00 : f32
    %37 = vector.broadcast %cst_15 : f32 to vector<8x96xf32>
    %38 = arith.addf %37, %36 : vector<8x96xf32>
    %39 = arith.divf %37, %38 : vector<8x96xf32>
    %40 = vector.extract_strided_slice %39 {offsets = [0, 0], sizes = [8, 32], strides = [1, 1]} : vector<8x96xf32> to vector<8x32xf32>
    %41 = vector.extract_strided_slice %39 {offsets = [0, 32], sizes = [8, 32], strides = [1, 1]} : vector<8x96xf32> to vector<8x32xf32>
    %42 = vector.extract_strided_slice %39 {offsets = [0, 64], sizes = [8, 32], strides = [1, 1]} : vector<8x96xf32> to vector<8x32xf32>
    %43 = vector.extract_strided_slice %33 {offsets = [0, 96], sizes = [8, 32], strides = [1, 1]} : vector<8x128xf32> to vector<8x32xf32>
    %44 = math.tanh %43 : vector<8x32xf32>
    %45 = arith.mulf %41, %21 : vector<8x32xf32>
    %46 = arith.mulf %40, %44 : vector<8x32xf32>
    %47 = arith.addf %45, %46 : vector<8x32xf32>
    %48 = math.tanh %47 : vector<8x32xf32>
    %49 = arith.mulf %42, %48 : vector<8x32xf32>
    %50 = arith.index_cast %c1_i32 : i32 to index
    %c0_16 = arith.constant 0 : index
    %c0_17 = arith.constant 0 : index
    %51 = vector.load %arg9[%50, %c0_16, %c0_17] : memref<8x8x32xf32, #tpu.memory_space<vmem>>, vector<1x8x32xf32>
    %52 = vector.shape_cast %51 : vector<1x8x32xf32> to vector<8x32xf32>
    %53 = vector.shape_cast %49 : vector<8x32xf32> to vector<1x8x32xf32>
    tpu.vector_store %arg9[%50, %c0_16, %c0_17], %53 {strides = array<i32>} : memref<8x8x32xf32, #tpu.memory_space<vmem>>, vector<1x8x32xf32>,
    %c2_i32 = arith.constant 2 : i32
    %54 = arith.index_cast %c2_i32 : i32 to index
    %c0_18 = arith.constant 0 : index
    %c0_19 = arith.constant 0 : index
    %55 = vector.load %arg0[%54, %c0_18, %c0_19] : memref<8x8x128xf32, #tpu.memory_space<vmem>>, vector<1x8x128xf32>
    %56 = vector.shape_cast %55 : vector<1x8x128xf32> to vector<8x128xf32>
    %c0_20 = arith.constant 0 : index
    %c0_21 = arith.constant 0 : index
    %57 = vector.load %arg3[%c0_20, %c0_21] : memref<32x128xf32, #tpu.memory_space<vmem>>, vector<32x128xf32>
    %cst_22 = arith.constant dense<0.000000e+00> : vector<8x128xf32>
    %58 = tpu.matmul %49, %57, %cst_22 {dimension_numbers = #tpu.dot_dimension_numbers<[1], [0], [0], [1], [0, 0, 1, 1], [], []>} : vector<8x32xf32>, vector<32x128xf32>, vector<8x128xf32> -> vector<8x128xf32>
    %59 = arith.addf %56, %58 : vector<8x128xf32>
    %60 = vector.extract_strided_slice %59 {offsets = [0, 0], sizes = [8, 96], strides = [1, 1]} : vector<8x128xf32> to vector<8x96xf32>
    %61 = arith.negf %60 : vector<8x96xf32>
    %62 = math.exp %61 : vector<8x96xf32>
    %cst_23 = arith.constant 1.000000e+00 : f32
    %63 = vector.broadcast %cst_23 : f32 to vector<8x96xf32>
    %64 = arith.addf %63, %62 : vector<8x96xf32>
    %65 = arith.divf %63, %64 : vector<8x96xf32>
    %66 = vector.extract_strided_slice %65 {offsets = [0, 0], sizes = [8, 32], strides = [1, 1]} : vector<8x96xf32> to vector<8x32xf32>
    %67 = vector.extract_strided_slice %65 {offsets = [0, 32], sizes = [8, 32], strides = [1, 1]} : vector<8x96xf32> to vector<8x32xf32>
    %68 = vector.extract_strided_slice %65 {offsets = [0, 64], sizes = [8, 32], strides = [1, 1]} : vector<8x96xf32> to vector<8x32xf32>
    %69 = vector.extract_strided_slice %59 {offsets = [0, 96], sizes = [8, 32], strides = [1, 1]} : vector<8x128xf32> to vector<8x32xf32>
    %70 = math.tanh %69 : vector<8x32xf32>
    %71 = arith.mulf %67, %47 : vector<8x32xf32>
    %72 = arith.mulf %66, %70 : vector<8x32xf32>
    %73 = arith.addf %71, %72 : vector<8x32xf32>
    %74 = math.tanh %73 : vector<8x32xf32>
    %75 = arith.mulf %68, %74 : vector<8x32xf32>
    %76 = arith.index_cast %c2_i32 : i32 to index
    %c0_24 = arith.constant 0 : index
    %c0_25 = arith.constant 0 : index
    %77 = vector.load %arg9[%76, %c0_24, %c0_25] : memref<8x8x32xf32, #tpu.memory_space<vmem>>, vector<1x8x32xf32>
    %78 = vector.shape_cast %77 : vector<1x8x32xf32> to vector<8x32xf32>
    %79 = vector.shape_cast %75 : vector<8x32xf32> to vector<1x8x32xf32>
    tpu.vector_store %arg9[%76, %c0_24, %c0_25], %79 {strides = array<i32>} : memref<8x8x32xf32, #tpu.memory_space<vmem>>, vector<1x8x32xf32>,
    %c3_i32 = arith.constant 3 : i32
    %80 = arith.index_cast %c3_i32 : i32 to index
    %c0_26 = arith.constant 0 : index
    %c0_27 = arith.constant 0 : index
    %81 = vector.load %arg0[%80, %c0_26, %c0_27] : memref<8x8x128xf32, #tpu.memory_space<vmem>>, vector<1x8x128xf32>
    %82 = vector.shape_cast %81 : vector<1x8x128xf32> to vector<8x128xf32>
    %c0_28 = arith.constant 0 : index
    %c0_29 = arith.constant 0 : index
    %83 = vector.load %arg3[%c0_28, %c0_29] : memref<32x128xf32, #tpu.memory_space<vmem>>, vector<32x128xf32>
    %cst_30 = arith.constant dense<0.000000e+00> : vector<8x128xf32>
    %84 = tpu.matmul %75, %83, %cst_30 {dimension_numbers = #tpu.dot_dimension_numbers<[1], [0], [0], [1], [0, 0, 1, 1], [], []>} : vector<8x32xf32>, vector<32x128xf32>, vector<8x128xf32> -> vector<8x128xf32>
    %85 = arith.addf %82, %84 : vector<8x128xf32>
    %86 = vector.extract_strided_slice %85 {offsets = [0, 0], sizes = [8, 96], strides = [1, 1]} : vector<8x128xf32> to vector<8x96xf32>
    %87 = arith.negf %86 : vector<8x96xf32>
    %88 = math.exp %87 : vector<8x96xf32>
    %cst_31 = arith.constant 1.000000e+00 : f32
    %89 = vector.broadcast %cst_31 : f32 to vector<8x96xf32>
    %90 = arith.addf %89, %88 : vector<8x96xf32>
    %91 = arith.divf %89, %90 : vector<8x96xf32>
    %92 = vector.extract_strided_slice %91 {offsets = [0, 0], sizes = [8, 32], strides = [1, 1]} : vector<8x96xf32> to vector<8x32xf32>
    %93 = vector.extract_strided_slice %91 {offsets = [0, 32], sizes = [8, 32], strides = [1, 1]} : vector<8x96xf32> to vector<8x32xf32>
    %94 = vector.extract_strided_slice %91 {offsets = [0, 64], sizes = [8, 32], strides = [1, 1]} : vector<8x96xf32> to vector<8x32xf32>
    %95 = vector.extract_strided_slice %85 {offsets = [0, 96], sizes = [8, 32], strides = [1, 1]} : vector<8x128xf32> to vector<8x32xf32>
    %96 = math.tanh %95 : vector<8x32xf32>
    %97 = arith.mulf %93, %73 : vector<8x32xf32>
    %98 = arith.mulf %92, %96 : vector<8x32xf32>
    %99 = arith.addf %97, %98 : vector<8x32xf32>
    %100 = math.tanh %99 : vector<8x32xf32>
    %101 = arith.mulf %94, %100 : vector<8x32xf32>
    %102 = arith.index_cast %c3_i32 : i32 to index
    %c0_32 = arith.constant 0 : index
    %c0_33 = arith.constant 0 : index
    %103 = vector.load %arg9[%102, %c0_32, %c0_33] : memref<8x8x32xf32, #tpu.memory_space<vmem>>, vector<1x8x32xf32>
    %104 = vector.shape_cast %103 : vector<1x8x32xf32> to vector<8x32xf32>
    %105 = vector.shape_cast %101 : vector<8x32xf32> to vector<1x8x32xf32>
    tpu.vector_store %arg9[%102, %c0_32, %c0_33], %105 {strides = array<i32>} : memref<8x8x32xf32, #tpu.memory_space<vmem>>, vector<1x8x32xf32>,
    %c4_i32 = arith.constant 4 : i32
    %106 = arith.index_cast %c4_i32 : i32 to index
    %c0_34 = arith.constant 0 : index
    %c0_35 = arith.constant 0 : index
    %107 = vector.load %arg0[%106, %c0_34, %c0_35] : memref<8x8x128xf32, #tpu.memory_space<vmem>>, vector<1x8x128xf32>
    %108 = vector.shape_cast %107 : vector<1x8x128xf32> to vector<8x128xf32>
    %c0_36 = arith.constant 0 : index
    %c0_37 = arith.constant 0 : index
    %109 = vector.load %arg3[%c0_36, %c0_37] : memref<32x128xf32, #tpu.memory_space<vmem>>, vector<32x128xf32>
    %cst_38 = arith.constant dense<0.000000e+00> : vector<8x128xf32>
    %110 = tpu.matmul %101, %109, %cst_38 {dimension_numbers = #tpu.dot_dimension_numbers<[1], [0], [0], [1], [0, 0, 1, 1], [], []>} : vector<8x32xf32>, vector<32x128xf32>, vector<8x128xf32> -> vector<8x128xf32>
    %111 = arith.addf %108, %110 : vector<8x128xf32>
    %112 = vector.extract_strided_slice %111 {offsets = [0, 0], sizes = [8, 96], strides = [1, 1]} : vector<8x128xf32> to vector<8x96xf32>
    %113 = arith.negf %112 : vector<8x96xf32>
    %114 = math.exp %113 : vector<8x96xf32>
    %cst_39 = arith.constant 1.000000e+00 : f32
    %115 = vector.broadcast %cst_39 : f32 to vector<8x96xf32>
    %116 = arith.addf %115, %114 : vector<8x96xf32>
    %117 = arith.divf %115, %116 : vector<8x96xf32>
    %118 = vector.extract_strided_slice %117 {offsets = [0, 0], sizes = [8, 32], strides = [1, 1]} : vector<8x96xf32> to vector<8x32xf32>
    %119 = vector.extract_strided_slice %117 {offsets = [0, 32], sizes = [8, 32], strides = [1, 1]} : vector<8x96xf32> to vector<8x32xf32>
    %120 = vector.extract_strided_slice %117 {offsets = [0, 64], sizes = [8, 32], strides = [1, 1]} : vector<8x96xf32> to vector<8x32xf32>
    %121 = vector.extract_strided_slice %111 {offsets = [0, 96], sizes = [8, 32], strides = [1, 1]} : vector<8x128xf32> to vector<8x32xf32>
    %122 = math.tanh %121 : vector<8x32xf32>
    %123 = arith.mulf %119, %99 : vector<8x32xf32>
    %124 = arith.mulf %118, %122 : vector<8x32xf32>
    %125 = arith.addf %123, %124 : vector<8x32xf32>
    %126 = math.tanh %125 : vector<8x32xf32>
    %127 = arith.mulf %120, %126 : vector<8x32xf32>
    %128 = arith.index_cast %c4_i32 : i32 to index
    %c0_40 = arith.constant 0 : index
    %c0_41 = arith.constant 0 : index
    %129 = vector.load %arg9[%128, %c0_40, %c0_41] : memref<8x8x32xf32, #tpu.memory_space<vmem>>, vector<1x8x32xf32>
    %130 = vector.shape_cast %129 : vector<1x8x32xf32> to vector<8x32xf32>
    %131 = vector.shape_cast %127 : vector<8x32xf32> to vector<1x8x32xf32>
    tpu.vector_store %arg9[%128, %c0_40, %c0_41], %131 {strides = array<i32>} : memref<8x8x32xf32, #tpu.memory_space<vmem>>, vector<1x8x32xf32>,
    %c5_i32 = arith.constant 5 : i32
    %132 = arith.index_cast %c5_i32 : i32 to index
    %c0_42 = arith.constant 0 : index
    %c0_43 = arith.constant 0 : index
    %133 = vector.load %arg0[%132, %c0_42, %c0_43] : memref<8x8x128xf32, #tpu.memory_space<vmem>>, vector<1x8x128xf32>
    %134 = vector.shape_cast %133 : vector<1x8x128xf32> to vector<8x128xf32>
    %c0_44 = arith.constant 0 : index
    %c0_45 = arith.constant 0 : index
    %135 = vector.load %arg3[%c0_44, %c0_45] : memref<32x128xf32, #tpu.memory_space<vmem>>, vector<32x128xf32>
    %cst_46 = arith.constant dense<0.000000e+00> : vector<8x128xf32>
    %136 = tpu.matmul %127, %135, %cst_46 {dimension_numbers = #tpu.dot_dimension_numbers<[1], [0], [0], [1], [0, 0, 1, 1], [], []>} : vector<8x32xf32>, vector<32x128xf32>, vector<8x128xf32> -> vector<8x128xf32>
    %137 = arith.addf %134, %136 : vector<8x128xf32>
    %138 = vector.extract_strided_slice %137 {offsets = [0, 0], sizes = [8, 96], strides = [1, 1]} : vector<8x128xf32> to vector<8x96xf32>
    %139 = arith.negf %138 : vector<8x96xf32>
    %140 = math.exp %139 : vector<8x96xf32>
    %cst_47 = arith.constant 1.000000e+00 : f32
    %141 = vector.broadcast %cst_47 : f32 to vector<8x96xf32>
    %142 = arith.addf %141, %140 : vector<8x96xf32>
    %143 = arith.divf %141, %142 : vector<8x96xf32>
    %144 = vector.extract_strided_slice %143 {offsets = [0, 0], sizes = [8, 32], strides = [1, 1]} : vector<8x96xf32> to vector<8x32xf32>
    %145 = vector.extract_strided_slice %143 {offsets = [0, 32], sizes = [8, 32], strides = [1, 1]} : vector<8x96xf32> to vector<8x32xf32>
    %146 = vector.extract_strided_slice %143 {offsets = [0, 64], sizes = [8, 32], strides = [1, 1]} : vector<8x96xf32> to vector<8x32xf32>
    %147 = vector.extract_strided_slice %137 {offsets = [0, 96], sizes = [8, 32], strides = [1, 1]} : vector<8x128xf32> to vector<8x32xf32>
    %148 = math.tanh %147 : vector<8x32xf32>
    %149 = arith.mulf %145, %125 : vector<8x32xf32>
    %150 = arith.mulf %144, %148 : vector<8x32xf32>
    %151 = arith.addf %149, %150 : vector<8x32xf32>
    %152 = math.tanh %151 : vector<8x32xf32>
    %153 = arith.mulf %146, %152 : vector<8x32xf32>
    %154 = arith.index_cast %c5_i32 : i32 to index
    %c0_48 = arith.constant 0 : index
    %c0_49 = arith.constant 0 : index
    %155 = vector.load %arg9[%154, %c0_48, %c0_49] : memref<8x8x32xf32, #tpu.memory_space<vmem>>, vector<1x8x32xf32>
    %156 = vector.shape_cast %155 : vector<1x8x32xf32> to vector<8x32xf32>
    %157 = vector.shape_cast %153 : vector<8x32xf32> to vector<1x8x32xf32>
    tpu.vector_store %arg9[%154, %c0_48, %c0_49], %157 {strides = array<i32>} : memref<8x8x32xf32, #tpu.memory_space<vmem>>, vector<1x8x32xf32>,
    %c6_i32 = arith.constant 6 : i32
    %158 = arith.index_cast %c6_i32 : i32 to index
    %c0_50 = arith.constant 0 : index
    %c0_51 = arith.constant 0 : index
    %159 = vector.load %arg0[%158, %c0_50, %c0_51] : memref<8x8x128xf32, #tpu.memory_space<vmem>>, vector<1x8x128xf32>
    %160 = vector.shape_cast %159 : vector<1x8x128xf32> to vector<8x128xf32>
    %c0_52 = arith.constant 0 : index
    %c0_53 = arith.constant 0 : index
    %161 = vector.load %arg3[%c0_52, %c0_53] : memref<32x128xf32, #tpu.memory_space<vmem>>, vector<32x128xf32>
    %cst_54 = arith.constant dense<0.000000e+00> : vector<8x128xf32>
    %162 = tpu.matmul %153, %161, %cst_54 {dimension_numbers = #tpu.dot_dimension_numbers<[1], [0], [0], [1], [0, 0, 1, 1], [], []>} : vector<8x32xf32>, vector<32x128xf32>, vector<8x128xf32> -> vector<8x128xf32>
    %163 = arith.addf %160, %162 : vector<8x128xf32>
    %164 = vector.extract_strided_slice %163 {offsets = [0, 0], sizes = [8, 96], strides = [1, 1]} : vector<8x128xf32> to vector<8x96xf32>
    %165 = arith.negf %164 : vector<8x96xf32>
    %166 = math.exp %165 : vector<8x96xf32>
    %cst_55 = arith.constant 1.000000e+00 : f32
    %167 = vector.broadcast %cst_55 : f32 to vector<8x96xf32>
    %168 = arith.addf %167, %166 : vector<8x96xf32>
    %169 = arith.divf %167, %168 : vector<8x96xf32>
    %170 = vector.extract_strided_slice %169 {offsets = [0, 0], sizes = [8, 32], strides = [1, 1]} : vector<8x96xf32> to vector<8x32xf32>
    %171 = vector.extract_strided_slice %169 {offsets = [0, 32], sizes = [8, 32], strides = [1, 1]} : vector<8x96xf32> to vector<8x32xf32>
    %172 = vector.extract_strided_slice %169 {offsets = [0, 64], sizes = [8, 32], strides = [1, 1]} : vector<8x96xf32> to vector<8x32xf32>
    %173 = vector.extract_strided_slice %163 {offsets = [0, 96], sizes = [8, 32], strides = [1, 1]} : vector<8x128xf32> to vector<8x32xf32>
    %174 = math.tanh %173 : vector<8x32xf32>
    %175 = arith.mulf %171, %151 : vector<8x32xf32>
    %176 = arith.mulf %170, %174 : vector<8x32xf32>
    %177 = arith.addf %175, %176 : vector<8x32xf32>
    %178 = math.tanh %177 : vector<8x32xf32>
    %179 = arith.mulf %172, %178 : vector<8x32xf32>
    %180 = arith.index_cast %c6_i32 : i32 to index
    %c0_56 = arith.constant 0 : index
    %c0_57 = arith.constant 0 : index
    %181 = vector.load %arg9[%180, %c0_56, %c0_57] : memref<8x8x32xf32, #tpu.memory_space<vmem>>, vector<1x8x32xf32>
    %182 = vector.shape_cast %181 : vector<1x8x32xf32> to vector<8x32xf32>
    %183 = vector.shape_cast %179 : vector<8x32xf32> to vector<1x8x32xf32>
    tpu.vector_store %arg9[%180, %c0_56, %c0_57], %183 {strides = array<i32>} : memref<8x8x32xf32, #tpu.memory_space<vmem>>, vector<1x8x32xf32>,
    %c7_i32 = arith.constant 7 : i32
    %184 = arith.index_cast %c7_i32 : i32 to index
    %c0_58 = arith.constant 0 : index
    %c0_59 = arith.constant 0 : index
    %185 = vector.load %arg0[%184, %c0_58, %c0_59] : memref<8x8x128xf32, #tpu.memory_space<vmem>>, vector<1x8x128xf32>
    %186 = vector.shape_cast %185 : vector<1x8x128xf32> to vector<8x128xf32>
    %c0_60 = arith.constant 0 : index
    %c0_61 = arith.constant 0 : index
    %187 = vector.load %arg3[%c0_60, %c0_61] : memref<32x128xf32, #tpu.memory_space<vmem>>, vector<32x128xf32>
    %cst_62 = arith.constant dense<0.000000e+00> : vector<8x128xf32>
    %188 = tpu.matmul %179, %187, %cst_62 {dimension_numbers = #tpu.dot_dimension_numbers<[1], [0], [0], [1], [0, 0, 1, 1], [], []>} : vector<8x32xf32>, vector<32x128xf32>, vector<8x128xf32> -> vector<8x128xf32>
    %189 = arith.addf %186, %188 : vector<8x128xf32>
    %190 = vector.extract_strided_slice %189 {offsets = [0, 0], sizes = [8, 96], strides = [1, 1]} : vector<8x128xf32> to vector<8x96xf32>
    %191 = arith.negf %190 : vector<8x96xf32>
    %192 = math.exp %191 : vector<8x96xf32>
    %cst_63 = arith.constant 1.000000e+00 : f32
    %193 = vector.broadcast %cst_63 : f32 to vector<8x96xf32>
    %194 = arith.addf %193, %192 : vector<8x96xf32>
    %195 = arith.divf %193, %194 : vector<8x96xf32>
    %196 = vector.extract_strided_slice %195 {offsets = [0, 0], sizes = [8, 32], strides = [1, 1]} : vector<8x96xf32> to vector<8x32xf32>
    %197 = vector.extract_strided_slice %195 {offsets = [0, 32], sizes = [8, 32], strides = [1, 1]} : vector<8x96xf32> to vector<8x32xf32>
    %198 = vector.extract_strided_slice %195 {offsets = [0, 64], sizes = [8, 32], strides = [1, 1]} : vector<8x96xf32> to vector<8x32xf32>
    %199 = vector.extract_strided_slice %189 {offsets = [0, 96], sizes = [8, 32], strides = [1, 1]} : vector<8x128xf32> to vector<8x32xf32>
    %200 = math.tanh %199 : vector<8x32xf32>
    %201 = arith.mulf %197, %177 : vector<8x32xf32>
    %202 = arith.mulf %196, %200 : vector<8x32xf32>
    %203 = arith.addf %201, %202 : vector<8x32xf32>
    %204 = math.tanh %203 : vector<8x32xf32>
    %205 = arith.mulf %198, %204 : vector<8x32xf32>
    %206 = arith.index_cast %c7_i32 : i32 to index
    %c0_64 = arith.constant 0 : index
    %c0_65 = arith.constant 0 : index
    %207 = vector.load %arg9[%206, %c0_64, %c0_65] : memref<8x8x32xf32, #tpu.memory_space<vmem>>, vector<1x8x32xf32>
    %208 = vector.shape_cast %207 : vector<1x8x32xf32> to vector<8x32xf32>
    %209 = vector.shape_cast %205 : vector<8x32xf32> to vector<1x8x32xf32>
    tpu.vector_store %arg9[%206, %c0_64, %c0_65], %209 {strides = array<i32>} : memref<8x8x32xf32, #tpu.memory_space<vmem>>, vector<1x8x32xf32>,
    %c8_i32 = arith.constant 8 : i32
    %c0_66 = arith.constant 0 : index
    %c0_67 = arith.constant 0 : index
    %210 = vector.load %arg7[%c0_66, %c0_67] : memref<8x32xf32, #tpu.memory_space<vmem>>, vector<8x32xf32>
    tpu.vector_store %arg7[%c0_66, %c0_67], %205 {strides = array<i32>} : memref<8x32xf32, #tpu.memory_space<vmem>>, vector<8x32xf32>,
    %c0_68 = arith.constant 0 : index
    %c0_69 = arith.constant 0 : index
    %211 = vector.load %arg8[%c0_68, %c0_69] : memref<8x32xf32, #tpu.memory_space<vmem>>, vector<8x32xf32>
    tpu.vector_store %arg8[%c0_68, %c0_69], %203 {strides = array<i32>} : memref<8x32xf32, #tpu.memory_space<vmem>>, vector<8x32xf32>,
    %c0_70 = arith.constant 0 : index
    %c0_71 = arith.constant 0 : index
    %c0_72 = arith.constant 0 : index
    %212 = vector.load %arg9[%c0_70, %c0_71, %c0_72] : memref<8x8x32xf32, #tpu.memory_space<vmem>>, vector<8x8x32xf32>
    %c0_73 = arith.constant 0 : index
    %c0_74 = arith.constant 0 : index
    %c0_75 = arith.constant 0 : index
    %213 = vector.load %arg4[%c0_73, %c0_74, %c0_75] : memref<1x1x32xf32, #tpu.memory_space<vmem>>, vector<1x1x32xf32>
    %214 = vector.broadcast %213 : vector<1x1x32xf32> to vector<8x8x32xf32>
    %215 = arith.mulf %212, %214 : vector<8x8x32xf32>
    %cst_76 = arith.constant dense<0.000000e+00> : vector<8x8xf32>
    %216 = vector.multi_reduction <add>, %215, %cst_76 [2] : vector<8x8x32xf32> to vector<8x8xf32>
    %217 = vector.shape_cast %216 : vector<8x8xf32> to vector<8x8x1xf32>
    %c0_77 = arith.constant 0 : index
    %218 = memref.load %arg5[%c0_77] : memref<1xf32, #tpu.memory_space<smem>>
    %219 = vector.broadcast %218 : f32 to vector<8x8x1xf32>
    %220 = arith.addf %217, %219 : vector<8x8x1xf32>
    %c0_78 = arith.constant 0 : index
    %c0_79 = arith.constant 0 : index
    %c0_80 = arith.constant 0 : index
    %221 = vector.load %arg6[%c0_78, %c0_79, %c0_80] : memref<8x8x1xf32, #tpu.memory_space<vmem>>, vector<8x8x1xf32>
    tpu.vector_store %arg6[%c0_78, %c0_79, %c0_80], %220 {strides = array<i32>} : memref<8x8x1xf32, #tpu.memory_space<vmem>>, vector<8x8x1xf32>,
    return
  }
}

</mosaic_0001>

<bundles_post_ra>
// kernel: lstm_decoder_forward.1
= control target key start
LH: loop header
LB: loop body
LE: loop exit
PB: predicated region body
PF: predicated region fallthrough
CT: control target
= control target key end

     0   :  { %v1259_v0 = vmov 0.0|0.0   ;;  %vm1260_vm0 = vmmov 0   ;;  %v1261_v4 = vmov 0.0   ;;  %vm34_vm1 = vcmask 261120   ;;  %s1262_s15 = smov 32   ;;  %s1264_s14 = smov 96   ;;  %s1507_s3 = inlined_call_operand.vmem [shape: f32[32,128], index: 3, kind: input, shape index: {}]   ;;  %s1508_s1 = inlined_call_operand.vmem [shape: f32[8,32], index: 1, kind: input, shape index: {}]   ;;  %s1509_s0 = inlined_call_operand.vmem [shape: f32[8,8,128], index: 0, kind: input, shape index: {}]   ;;  %s1510_s2 = inlined_call_operand.vmem [shape: f32[8,32], index: 2, kind: input, shape index: {}]   ;;  %s1511_s4 = inlined_call_operand.vmem [shape: f32[1,1,32], index: 4, kind: input, shape index: {}]   ;;  %s1512_s5 = inlined_call_operand.<no memory space> [shape: f32[1], index: 5, kind: input, shape index: {}]   ;;  %s1513_s6 = inlined_call_operand.vmem [shape: f32[8,8,1], index: 6, kind: output, shape index: {0}]   ;;  %s1514_s7 = inlined_call_operand.vmem [shape: f32[8,32], index: 7, kind: output, shape index: {1}]   ;;  %s1515_s8 = inlined_call_operand.vmem [shape: f32[8,32], index: 8, kind: output, shape index: {2}]  }
   0x1   :  { %1141 = vmatprep.subr.bf16.mxu0 %v1259_v0  ;;  %v30_v1 = vld [vmem:[%s1507_s3] sm:$0xff]  ;;  %v31_v2 = vld [vmem:[%s1507_s3 + $0x8] sm:$0xff]  ;;  %v32_v3 = vld [vmem:[%s1507_s3 + $0x10] sm:$0xff]  ;;  %1061 = vmatprep.mubr.msk.f32.mxu0 %vm1260_vm0, %v1261_v4  ;;  %vm968_vm2 = vcmask 7168  }
   0x2   :  { %v1322_v5 = vpack.c.bf16 %v31_v2, %v30_v1  ;;  %v33_v6 = vld [vmem:[%s1507_s3 + $0x18] sm:$0xff]  ;;  %1147 = vmatprep.subr.bf16.mxu1 %v1259_v0  ;;  %1072 = vmatprep.mubr.msk.f32.mxu1 %vm1260_vm0, %v1261_v4  ;;  %v27_v8 = vld [vmem:[%s1508_s1] sm:$0xff]  ;;  %v991_v29 = vld [vmem:[%s1509_s0 + $0x8] sm:$0xff] }
   0x3   :  { %v1331_v7 = vpack.c.bf16 %v33_v6, %v32_v3  ;;  %v29_v9 = vld [vmem:[%s1509_s0] sm:$0xff]  ;;  %v994_v47 = vld [vmem:[%s1509_s0 + $0x10] sm:$0xff]  ;;  %v997_v2 = vld [vmem:[%s1509_s0 + $0x18] sm:$0xff] }
   0x4   :  { %1143 = vmatpush3.bf16.msra.mxu0 %v1322_v5  ;;  %1149 = vmatpush3.bf16.msra.mxu1 %v1322_v5  ;;  %v28_v14 = vld [vmem:[%s1510_s2] sm:$0xff]  ;;  %s1263_s2 = smov 64  }
   0x5   :  { %1144 = vmatprep.subr.bf16.mxu0 %v1259_v0  ;;  %1150 = vmatprep.subr.bf16.mxu1 %v1259_v0 }
   0x8   :  { %1146 = vmatpush3.bf16.msra.mxu0 %v1331_v7  ;;  %1152 = vmatpush3.bf16.msra.mxu1 %v1331_v7 }
   0x9   :  { %1153 = vmatprep.subr.bf16.mxu0 %v1259_v0  ;;  %1159 = vmatprep.subr.bf16.mxu1 %v1259_v0 }
   0xb   :  { %1062 = vmatmul.mubr.msk.f32.vlgmr.msra.gmra.mrb[0].mxu0 %vm34_vm1, %v27_v8 }
   0xc   :  { %1155 = vmatpush3.bf16.msra.mxu0 %v1322_v5  ;;  %1083 = vmatprep.mubr.msk.f32.mxu0 %vm1260_vm0, %v1261_v4 }
   0xd   :  { %1156 = vmatprep.subr.bf16.mxu0 %v1259_v0 }
  0x10   :  { %1158 = vmatpush3.bf16.msra.mxu0 %v1331_v7 }
  0x11   :  { %1165 = vmatprep.subr.bf16.mxu0 %v1259_v0 }
  0xde   :  { %v104_v10 = vpop.f32.mrb[0].mxu0 }
  0xdf   :  { %v108_v11 = vadd.f32 %v104_v10, %v29_v9  ;;  %v1063_v12 = vpop.f32.mrb[1].mxu0 }
  0xe1   :  { %1195 = vtanh.f32 %v108_v11  ;;  %v990_v15 = vmul.f32 -1.442695, %v108_v11 }
  0xe3   :  { %1197 = vpow2.f32 %v990_v15 }
  0xeb   :  { %v1196_v13 = vpop.eup %1195 }
  0xec   :  { %122 = vrot.lane.b32.xlu0 %v1196_v13, %s1262_s15 }
  0xed   :  { %v1198_v16 = vpop.eup %1197 }
  0xee   :  { %v112_v17 = vadd.f32 1.0, %v1198_v16 }
  0xf0   :  { %117 = vrot.lane.b32.xlu0 %v28_v14, %s1262_s15  ;;  %1199 = vrcp.f32 %v112_v17 }
  0xfa   :  { %v1200_v18 = vpop.eup %1199 }
 0x15e   :  { %v123_v19 = vpop.permute.xlu0 %122 }
 0x15f   :  { %v125_v20 = vmul.f32 %v1200_v18, %v123_v19 }
 0x161   :  { %127 = vrot.lane.b32.xlu1 %v125_v20, %s1262_s15 }
 0x162   :  { %v118_v21 = vpop.permute.xlu0 %117 }
 0x163   :  { %v120_v22 = vmul.f32 %v1200_v18, %v118_v21 }
 0x1d3   :  { %v128_v23 = vpop.permute.xlu1 %127 }
 0x1d4   :  { %v130_v24 = vadd.f32 %v128_v23, %v120_v22  ;;  %v1000_v23 = vld [vmem:[%s1509_s0 + $0x20] sm:$0xff] }
 0x1d6   :  { %1201 = vtanh.f32 %v130_v24 }
 0x1e0   :  { %v1202_v25 = vpop.eup %1201 }
 0x1e1   :  { %133 = vrot.lane.b32.xlu1 %v1202_v25, %s1262_s15 }
 0x253   :  { %v134_v26 = vpop.permute.xlu1 %133 }
 0x254   :  { %v136_v27 = vmul.f32 %v1200_v18, %v134_v26 }
 0x256   :  { %138 = vrot.lane.b32.xlu0 %v136_v27, %s1263_s2 }
 0x2c8   :  { %v139_v28 = vpop.permute.xlu0 %138 }
 0x2c9   :  { %141 = vst.msk [vmem:[#allocation2] sm:$0xff] %vm34_vm1, %v139_v28  ;;  %1073 = vmatmul.mubr.msk.f32.vlgmr.msra.gmra.mrb[0].mxu1 %vm34_vm1, %v139_v28 }
 0x2ca   :  { %1161 = vmatpush3.bf16.msra.mxu1 %v1322_v5  ;;  %1094 = vmatprep.mubr.msk.f32.mxu1 %vm1260_vm0, %v1261_v4 }
 0x2cb   :  { %1162 = vmatprep.subr.bf16.mxu1 %v1259_v0 }
 0x2ce   :  { %1164 = vmatpush3.bf16.msra.mxu1 %v1331_v7 }
 0x2cf   :  { %1171 = vmatprep.subr.bf16.mxu1 %v1259_v0 }
 0x39c   :  { %v216_v30 = vpop.f32.mrb[0].mxu1 }
 0x39d   :  { %v220_v31 = vadd.f32 %v991_v29, %v216_v30  ;;  %v1074_v32 = vpop.f32.mrb[1].mxu1 }
 0x39f   :  { %1203 = vtanh.f32 %v220_v31  ;;  %v993_v34 = vmul.f32 -1.442695, %v220_v31 }
 0x3a1   :  { %1205 = vpow2.f32 %v993_v34 }
 0x3a9   :  { %v1204_v33 = vpop.eup %1203 }
 0x3aa   :  { %230 = vrot.lane.b32.xlu1 %v1204_v33, %s1262_s15 }
 0x3ab   :  { %v1206_v35 = vpop.eup %1205 }
 0x3ac   :  { %v224_v36 = vadd.f32 1.0, %v1206_v35 }
 0x3ae   :  { %1207 = vrcp.f32 %v224_v36 }
 0x3b8   :  { %v1208_v37 = vpop.eup %1207 }
 0x3b9   :  { %v228_v40 = vmul.f32 %v1208_v37, %v130_v24 }
 0x41c   :  { %v231_v38 = vpop.permute.xlu1 %230 }
 0x41d   :  { %v233_v39 = vmul.f32 %v1208_v37, %v231_v38 }
 0x41f   :  { %235 = vrot.lane.b32.xlu0 %v233_v39, %s1262_s15 }
 0x491   :  { %v236_v41 = vpop.permute.xlu0 %235 }
 0x492   :  { %v238_v42 = vadd.f32 %v236_v41, %v228_v40  ;;  %v1003_v41 = vld [vmem:[%s1509_s0 + $0x28] sm:$0xff] }
 0x494   :  { %1209 = vtanh.f32 %v238_v42 }
 0x49e   :  { %v1210_v43 = vpop.eup %1209 }
 0x49f   :  { %241 = vrot.lane.b32.xlu1 %v1210_v43, %s1262_s15 }
 0x511   :  { %v242_v44 = vpop.permute.xlu1 %241 }
 0x512   :  { %v244_v45 = vmul.f32 %v1208_v37, %v242_v44 }
 0x514   :  { %246 = vrot.lane.b32.xlu0 %v244_v45, %s1263_s2 }
 0x586   :  { %v247_v46 = vpop.permute.xlu0 %246 }
 0x587   :  { %250 = vst.msk [vmem:[#allocation2 + $0x8] sm:$0xff] %vm34_vm1, %v247_v46  ;;  %1084 = vmatmul.mubr.msk.f32.vlgmr.msra.gmra.mrb[2].mxu0 %vm34_vm1, %v247_v46 }
 0x588   :  { %1167 = vmatpush3.bf16.msra.mxu0 %v1322_v5  ;;  %1105 = vmatprep.mubr.msk.f32.mxu0 %vm1260_vm0, %v1261_v4 }
 0x589   :  { %1168 = vmatprep.subr.bf16.mxu0 %v1259_v0 }
 0x58c   :  { %1170 = vmatpush3.bf16.msra.mxu0 %v1331_v7 }
 0x58d   :  { %1177 = vmatprep.subr.bf16.mxu0 %v1259_v0 }
 0x65a   :  { %v325_v48 = vpop.f32.mrb[2].mxu0 }
 0x65b   :  { %v329_v49 = vadd.f32 %v994_v47, %v325_v48  ;;  %v1085_v50 = vpop.f32.mrb[3].mxu0 }
 0x65d   :  { %1211 = vtanh.f32 %v329_v49  ;;  %v996_v52 = vmul.f32 -1.442695, %v329_v49 }
 0x65f   :  { %1213 = vpow2.f32 %v996_v52 }
 0x667   :  { %v1212_v51 = vpop.eup %1211 }
 0x668   :  { %339 = vrot.lane.b32.xlu1 %v1212_v51, %s1262_s15 }
 0x669   :  { %v1214_v53 = vpop.eup %1213 }
 0x66a   :  { %v333_v54 = vadd.f32 1.0, %v1214_v53 }
 0x66c   :  { %1215 = vrcp.f32 %v333_v54 }
 0x676   :  { %v1216_v55 = vpop.eup %1215 }
 0x677   :  { %v337_v58 = vmul.f32 %v1216_v55, %v238_v42 }
 0x6da   :  { %v340_v56 = vpop.permute.xlu1 %339 }
 0x6db   :  { %v342_v57 = vmul.f32 %v1216_v55, %v340_v56 }
 0x6dd   :  { %344 = vrot.lane.b32.xlu0 %v342_v57, %s1262_s15 }
 0x74f   :  { %v345_v59 = vpop.permute.xlu0 %344 }
 0x750   :  { %v347_v60 = vadd.f32 %v345_v59, %v337_v58 }
 0x752   :  { %1217 = vtanh.f32 %v347_v60 }
 0x75c   :  { %v1218_v61 = vpop.eup %1217 }
 0x75d   :  { %350 = vrot.lane.b32.xlu1 %v1218_v61, %s1262_s15 }
 0x7cf   :  { %v351_v62 = vpop.permute.xlu1 %350 }
 0x7d0   :  { %v353_v63 = vmul.f32 %v1216_v55, %v351_v62  ;;  %v1006_v55 = vld [vmem:[%s1509_s0 + $0x30] sm:$0xff] }
 0x7d2   :  { %355 = vrot.lane.b32.xlu0 %v353_v63, %s1263_s2 }
 0x844   :  { %v356_v1 = vpop.permute.xlu0 %355 }
 0x845   :  { %359 = vst.msk [vmem:[#allocation2 + $0x10] sm:$0xff] %vm34_vm1, %v356_v1  ;;  %1095 = vmatmul.mubr.msk.f32.vlgmr.msra.gmra.mrb[2].mxu1 %vm34_vm1, %v356_v1 }
 0x846   :  { %1173 = vmatpush3.bf16.msra.mxu1 %v1322_v5  ;;  %1116 = vmatprep.mubr.msk.f32.mxu1 %vm1260_vm0, %v1261_v4 }
 0x847   :  { %1174 = vmatprep.subr.bf16.mxu1 %v1259_v0 }
 0x84a   :  { %1176 = vmatpush3.bf16.msra.mxu1 %v1331_v7 }
 0x84b   :  { %1183 = vmatprep.subr.bf16.mxu1 %v1259_v0 }
 0x918   :  { %v434_v3 = vpop.f32.mrb[2].mxu1 }
 0x919   :  { %v438_v6 = vadd.f32 %v997_v2, %v434_v3  ;;  %v1096_v8 = vpop.f32.mrb[3].mxu1 }
 0x91b   :  { %1219 = vtanh.f32 %v438_v6  ;;  %v999_v10 = vmul.f32 -1.442695, %v438_v6 }
 0x91d   :  { %1221 = vpow2.f32 %v999_v10 }
 0x925   :  { %v1220_v9 = vpop.eup %1219 }
 0x926   :  { %448 = vrot.lane.b32.xlu1 %v1220_v9, %s1262_s15 }
 0x927   :  { %v1222_v11 = vpop.eup %1221 }
 0x928   :  { %v442_v12 = vadd.f32 1.0, %v1222_v11 }
 0x92a   :  { %1223 = vrcp.f32 %v442_v12 }
 0x934   :  { %v1224_v13 = vpop.eup %1223 }
 0x935   :  { %v446_v16 = vmul.f32 %v1224_v13, %v347_v60 }
 0x998   :  { %v449_v14 = vpop.permute.xlu1 %448 }
 0x999   :  { %v451_v15 = vmul.f32 %v1224_v13, %v449_v14 }
 0x99b   :  { %453 = vrot.lane.b32.xlu0 %v451_v15, %s1262_s15 }
 0xa0d   :  { %v454_v17 = vpop.permute.xlu0 %453 }
 0xa0e   :  { %v456_v18 = vadd.f32 %v454_v17, %v446_v16 }
 0xa10   :  { %1225 = vtanh.f32 %v456_v18 }
 0xa1a   :  { %v1226_v19 = vpop.eup %1225 }
 0xa1b   :  { %459 = vrot.lane.b32.xlu1 %v1226_v19, %s1262_s15 }
 0xa8d   :  { %v460_v20 = vpop.permute.xlu1 %459 }
 0xa8e   :  { %v462_v21 = vmul.f32 %v1224_v13, %v460_v20  ;;  %v1009_v13 = vld [vmem:[%s1509_s0 + $0x38] sm:$0xff] }
 0xa90   :  { %464 = vrot.lane.b32.xlu0 %v462_v21, %s1263_s2 }
 0xb02   :  { %v465_v22 = vpop.permute.xlu0 %464 }
 0xb03   :  { %468 = vst.msk [vmem:[#allocation2 + $0x18] sm:$0xff] %vm34_vm1, %v465_v22  ;;  %1106 = vmatmul.mubr.msk.f32.vlgmr.msra.gmra.mrb[4].mxu0 %vm34_vm1, %v465_v22 }
 0xb04   :  { %1179 = vmatpush3.bf16.msra.mxu0 %v1322_v5  ;;  %1127 = vmatprep.mubr.msk.f32.mxu0 %vm1260_vm0, %v1261_v4 }
 0xb05   :  { %1180 = vmatprep.subr.bf16.mxu0 %v1259_v0 }
 0xb08   :  { %1182 = vmatpush3.bf16.msra.mxu0 %v1331_v7 }
 0xbd6   :  { %v543_v24 = vpop.f32.mrb[4].mxu0 }
 0xbd7   :  { %v547_v25 = vadd.f32 %v1000_v23, %v543_v24  ;;  %v1107_v26 = vpop.f32.mrb[5].mxu0 }
 0xbd9   :  { %1227 = vtanh.f32 %v547_v25  ;;  %v1002_v28 = vmul.f32 -1.442695, %v547_v25 }
 0xbdb   :  { %1229 = vpow2.f32 %v1002_v28  ;;  %v911_v28 = vld [vmem:[#allocation2] sm:$0xff] }
 0xbe3   :  { %v1228_v27 = vpop.eup %1227 }
 0xbe4   :  { %557 = vrot.lane.b32.xlu1 %v1228_v27, %s1262_s15 }
 0xbe5   :  { %v1230_v29 = vpop.eup %1229 }
 0xbe6   :  { %v551_v30 = vadd.f32 1.0, %v1230_v29  ;;  %v1012_v29 = vld [vmem:[%s1511_s4] ss:$0 sm:$0xff] }
 0xbe8   :  { %1231 = vrcp.f32 %v551_v30  ;;  %v926_v30 = vmul.f32 %v1012_v29, %v911_v28 }
 0xbf2   :  { %v1232_v31 = vpop.eup %1231 }
 0xbf3   :  { %v555_v34 = vmul.f32 %v1232_v31, %v456_v18 }
 0xc56   :  { %v558_v32 = vpop.permute.xlu1 %557 }
 0xc57   :  { %v560_v33 = vmul.f32 %v1232_v31, %v558_v32  ;;  %v934_v32 = vsel %vm34_vm1, %v926_v30, 0.0 }
 0xc59   :  { %562 = vrot.lane.b32.xlu0 %v560_v33, %s1262_s15 }
 0xccb   :  { %v563_v35 = vpop.permute.xlu0 %562 }
 0xccc   :  { %v565_v36 = vadd.f32 %v563_v35, %v555_v34 }
 0xcce   :  { %1233 = vtanh.f32 %v565_v36 }
 0xcd8   :  { %v1234_v37 = vpop.eup %1233 }
 0xcd9   :  { %568 = vrot.lane.b32.xlu1 %v1234_v37, %s1262_s15 }
 0xd4b   :  { %v569_v38 = vpop.permute.xlu1 %568 }
 0xd4c   :  { %v571_v39 = vmul.f32 %v1232_v31, %v569_v38  ;;  %v914_v31 = vld [vmem:[#allocation2 + $0x18] sm:$0xff] }
 0xd4d   :  { %v929_v33 = vmul.f32 %v1012_v29, %v914_v31 }
 0xd4e   :  { %573 = vrot.lane.b32.xlu0 %v571_v39, %s1263_s2 }
 0xd4f   :  { %v943_v35 = vsel %vm34_vm1, %v929_v33, 0.0 }
 0xdc0   :  { %v574_v40 = vpop.permute.xlu0 %573 }
 0xdc1   :  { %577 = vst.msk [vmem:[#allocation2 + $0x20] sm:$0xff] %vm34_vm1, %v574_v40  ;;  %1117 = vmatmul.mubr.msk.f32.vlgmr.msra.gmra.mrb[4].mxu1 %vm34_vm1, %v574_v40  ;;  %v912_v40 = vld [vmem:[#allocation2 + $0x8] sm:$0xff] }
 0xdc2   :  { %1185 = vmatpush3.bf16.msra.mxu1 %v1322_v5  ;;  %1138 = vmatprep.mubr.msk.f32.mxu1 %vm1260_vm0, %v1261_v4 }
 0xdc3   :  { %1186 = vmatprep.subr.bf16.mxu1 %v1259_v0 }
 0xdc6   :  { %1188 = vmatpush3.bf16.msra.mxu1 %v1331_v7 }
 0xe94   :  { %v652_v42 = vpop.f32.mrb[4].mxu1 }
 0xe95   :  { %v656_v43 = vadd.f32 %v1003_v41, %v652_v42  ;;  %v1118_v44 = vpop.f32.mrb[5].mxu1  ;;  %v927_v41 = vmul.f32 %v1012_v29, %v912_v40  ;;  %v913_v42 = vld [vmem:[#allocation2 + $0x10] sm:$0xff] }
 0xe96   :  { %v928_v44 = vmul.f32 %v1012_v29, %v913_v42 }
 0xe97   :  { %1235 = vtanh.f32 %v656_v43  ;;  %v1005_v46 = vmul.f32 -1.442695, %v656_v43  ;;  %v937_v43 = vsel %vm34_vm1, %v927_v41, 0.0 }
 0xe99   :  { %1237 = vpow2.f32 %v1005_v46  ;;  %v940_v46 = vsel %vm34_vm1, %v928_v44, 0.0 }
 0xea1   :  { %v1236_v45 = vpop.eup %1235 }
 0xea2   :  { %666 = vrot.lane.b32.xlu1 %v1236_v45, %s1262_s15  ;;  %v915_v45 = vld [vmem:[#allocation2 + $0x20] sm:$0xff] }
 0xea3   :  { %v1238_v5 = vpop.eup %1237 }
 0xea4   :  { %v660_v47 = vadd.f32 1.0, %v1238_v5  ;;  %v930_v5 = vmul.f32 %v1012_v29, %v915_v45 }
 0xea6   :  { %1239 = vrcp.f32 %v660_v47 }
 0xeb0   :  { %v1240_v4 = vpop.eup %1239 }
 0xeb1   :  { %v664_v7 = vmul.f32 %v1240_v4, %v565_v36 }
 0xf14   :  { %v667_v0 = vpop.permute.xlu1 %666 }
 0xf15   :  { %v669_v48 = vmul.f32 %v1240_v4, %v667_v0 }
 0xf17   :  { %671 = vrot.lane.b32.xlu0 %v669_v48, %s1262_s15 }
 0xf89   :  { %v672_v49 = vpop.permute.xlu0 %671 }
 0xf8a   :  { %v674_v50 = vadd.f32 %v672_v49, %v664_v7  ;;  %v959_v7 = vstv %s1512_s5 }
 0xf8c   :  { %1241 = vtanh.f32 %v674_v50 }
 0xf96   :  { %v1242_v51 = vpop.eup %1241 }
 0xf97   :  { %677 = vrot.lane.b32.xlu1 %v1242_v51, %s1262_s15 }
0x1009   :  { %v678_v52 = vpop.permute.xlu1 %677 }
0x100a   :  { %v680_v53 = vmul.f32 %v1240_v4, %v678_v52  ;;  %v946_v4 = vsel %vm34_vm1, %v930_v5, 0.0 }
0x100c   :  { %682 = vrot.lane.b32.xlu0 %v680_v53, %s1263_s2 }
0x107e   :  { %v683_v54 = vpop.permute.xlu0 %682 }
0x107f   :  { %686 = vst.msk [vmem:[#allocation2 + $0x28] sm:$0xff] %vm34_vm1, %v683_v54  ;;  %1128 = vmatmul.mubr.msk.f32.vlgmr.msra.gmra.mrb[6].mxu0 %vm34_vm1, %v683_v54 }
0x1086   :  { %v916_v34 = vld [vmem:[#allocation2 + $0x28] sm:$0xff] }
0x1087   :  { %v931_v36 = vmul.f32 %v1012_v29, %v916_v34 }
0x1089   :  { %v949_v37 = vsel %vm34_vm1, %v931_v36, 0.0 }
0x1152   :  { %v761_v56 = vpop.f32.mrb[6].mxu0 }
0x1153   :  { %v765_v57 = vadd.f32 %v1006_v55, %v761_v56  ;;  %v1129_v58 = vpop.f32.mrb[7].mxu0 }
0x1155   :  { %1243 = vtanh.f32 %v765_v57  ;;  %v1008_v60 = vmul.f32 -1.442695, %v765_v57 }
0x1157   :  { %1245 = vpow2.f32 %v1008_v60 }
0x115f   :  { %v1244_v59 = vpop.eup %1243 }
0x1160   :  { %775 = vrot.lane.b32.xlu1 %v1244_v59, %s1262_s15 }
0x1161   :  { %v1246_v61 = vpop.eup %1245 }
0x1162   :  { %v769_v62 = vadd.f32 1.0, %v1246_v61 }
0x1164   :  { %1247 = vrcp.f32 %v769_v62 }
0x116e   :  { %v1248_v63 = vpop.eup %1247 }
0x116f   :  { %v773_v3 = vmul.f32 %v1248_v63, %v674_v50 }
0x11d2   :  { %v776_v1 = vpop.permute.xlu1 %775 }
0x11d3   :  { %v778_v2 = vmul.f32 %v1248_v63, %v776_v1 }
0x11d5   :  { %780 = vrot.lane.b32.xlu0 %v778_v2, %s1262_s15 }
0x1247   :  { %v781_v6 = vpop.permute.xlu0 %780 }
0x1248   :  { %v783_v8 = vadd.f32 %v781_v6, %v773_v3 }
0x124a   :  { %1249 = vtanh.f32 %v783_v8 }
0x1254   :  { %v1250_v9 = vpop.eup %1249 }
0x1255   :  { %786 = vrot.lane.b32.xlu1 %v1250_v9, %s1262_s15 }
0x12c7   :  { %v787_v10 = vpop.permute.xlu1 %786 }
0x12c8   :  { %v789_v11 = vmul.f32 %v1248_v63, %v787_v10 }
0x12ca   :  { %791 = vrot.lane.b32.xlu0 %v789_v11, %s1263_s2 }
0x133c   :  { %v792_v12 = vpop.permute.xlu0 %791 }
0x133d   :  { %795 = vst.msk [vmem:[#allocation2 + $0x30] sm:$0xff] %vm34_vm1, %v792_v12  ;;  %1139 = vmatmul.mubr.msk.f32.vlgmr.msra.gmra.mrb[6].mxu1 %vm34_vm1, %v792_v12 }
0x1344   :  { %v917_v47 = vld [vmem:[#allocation2 + $0x30] sm:$0xff] }
0x1345   :  { %v932_v0 = vmul.f32 %v1012_v29, %v917_v47 }
0x1347   :  { %v952_v48 = vsel %vm34_vm1, %v932_v0, 0.0 }
0x1410   :  { %v870_v14 = vpop.f32.mrb[6].mxu1 }
0x1411   :  { %v874_v15 = vadd.f32 %v1009_v13, %v870_v14  ;;  %v1140_v16 = vpop.f32.mrb[7].mxu1 }
0x1413   :  { %1251 = vtanh.f32 %v874_v15  ;;  %v1011_v18 = vmul.f32 -1.442695, %v874_v15 }
0x1415   :  { %1253 = vpow2.f32 %v1011_v18 }
0x141d   :  { %v1252_v17 = vpop.eup %1251 }
0x141e   :  { %884 = vrot.lane.b32.xlu1 %v1252_v17, %s1262_s15 }
0x141f   :  { %v1254_v19 = vpop.eup %1253 }
0x1420   :  { %v878_v20 = vadd.f32 1.0, %v1254_v19 }
0x1422   :  { %1255 = vrcp.f32 %v878_v20 }
0x142c   :  { %v1256_v21 = vpop.eup %1255 }
0x142d   :  { %v882_v24 = vmul.f32 %v1256_v21, %v783_v8 }
0x1490   :  { %v885_v22 = vpop.permute.xlu1 %884 }
0x1491   :  { %v887_v23 = vmul.f32 %v1256_v21, %v885_v22 }
0x1493   :  { %889 = vrot.lane.b32.xlu0 %v887_v23, %s1262_s15 }
0x1505   :  { %v890_v25 = vpop.permute.xlu0 %889 }
0x1506   :  { %v892_v26 = vadd.f32 %v890_v25, %v882_v24 }
0x1508   :  { %1257 = vtanh.f32 %v892_v26 }
0x1512   :  { %v1258_v27 = vpop.eup %1257 }
0x1513   :  { %895 = vrot.lane.b32.xlu1 %v1258_v27, %s1262_s15 }
0x1537   :  { %935 = vadd.xlane.f32.xlu1 %v934_v32 }
0x153b   :  { %944 = vadd.xlane.f32.xlu1 %v943_v35 }
0x153f   :  { %950 = vadd.xlane.f32.xlu1 %v949_v37 }
0x1585   :  { %v896_v38 = vpop.permute.xlu1 %895 }
0x1586   :  { %v898_v39 = vmul.f32 %v1256_v21, %v896_v38 }
0x1588   :  { %900 = vrot.lane.b32.xlu0 %v898_v39, %s1263_s2 }
0x15a7   :  { %938 = vadd.xlane.f32.xlu0 %v937_v43 }
0x15ab   :  { %941 = vadd.xlane.f32.xlu0 %v940_v46 }
0x15af   :  { %947 = vadd.xlane.f32.xlu0 %v946_v4 }
0x15b3   :  { %953 = vadd.xlane.f32.xlu0 %v952_v48 }
0x15c4   :  { %v936_v49 = vpop.xlane.xlu1 %935 }
0x15c5   :  { %v960_v50 = vadd.f32 %v959_v7, %v936_v49 }
0x15c7   :  { %969 = vst.msk [vmem:[%s1513_s6] sm:$0xff] %vm968_vm2, %v960_v50 }
0x15c8   :  { %v945_v51 = vpop.xlane.xlu1 %944 }
0x15c9   :  { %v963_v52 = vadd.f32 %v959_v7, %v945_v51  ;;  %907 = vrot.lane.b32.xlu0 %v892_v26, %s1264_s14 }
0x15cb   :  { %972 = vst.msk [vmem:[%s1513_s6 + $0x18] sm:$0xff] %vm968_vm2, %v963_v52 }
0x15cc   :  { %v951_v53 = vpop.xlane.xlu1 %950 }
0x15cd   :  { %v965_v54 = vadd.f32 %v959_v7, %v951_v53 }
0x15cf   :  { %974 = vst.msk [vmem:[%s1513_s6 + $0x28] sm:$0xff] %vm968_vm2, %v965_v54 }
0x15fa   :  { %v901_v55 = vpop.permute.xlu0 %900 }
0x15fb   :  { %904 = vst.msk [vmem:[#allocation2 + $0x38] sm:$0xff] %vm34_vm1, %v901_v55  ;;  %905 = vst.msk [vmem:[%s1514_s7] sm:$0xff] %vm34_vm1, %v901_v55 }
0x1602   :  { %v918_v56 = vld [vmem:[#allocation2 + $0x38] sm:$0xff] }
0x1603   :  { %v933_v57 = vmul.f32 %v1012_v29, %v918_v56 }
0x1605   :  { %v955_v58 = vsel %vm34_vm1, %v933_v57, 0.0 }
0x1606   :  { %956 = vadd.xlane.f32.xlu1 %v955_v58 }
0x1634   :  { %v939_v59 = vpop.xlane.xlu0 %938 }
0x1635   :  { %v961_v60 = vadd.f32 %v959_v7, %v939_v59 }
0x1637   :  { %970 = vst.msk [vmem:[%s1513_s6 + $0x8] sm:$0xff] %vm968_vm2, %v961_v60 }
0x1638   :  { %v942_v61 = vpop.xlane.xlu0 %941 }
0x1639   :  { %v962_v62 = vadd.f32 %v959_v7, %v942_v61 }
0x163b   :  { %971 = vst.msk [vmem:[%s1513_s6 + $0x10] sm:$0xff] %vm968_vm2, %v962_v62 }
0x163c   :  { %v948_v63 = vpop.xlane.xlu0 %947 }
0x163d   :  { %v964_v1 = vadd.f32 %v959_v7, %v948_v63 }
0x163f   :  { %973 = vst.msk [vmem:[%s1513_s6 + $0x20] sm:$0xff] %vm968_vm2, %v964_v1 }
0x1640   :  { %v954_v2 = vpop.xlane.xlu0 %953 }
0x1641   :  { %v966_v3 = vadd.f32 %v959_v7, %v954_v2 }
0x1643   :  { %975 = vst.msk [vmem:[%s1513_s6 + $0x30] sm:$0xff] %vm968_vm2, %v966_v3 }
0x1644   :  { %v908_v6 = vpop.permute.xlu0 %907 }
0x1645   :  { %910 = vst.msk [vmem:[%s1515_s8] sm:$0xff] %vm34_vm1, %v908_v6 }
0x1693   :  { %v957_v8 = vpop.xlane.xlu1 %956 }
0x1694   :  { %v967_v9 = vadd.f32 %v959_v7, %v957_v8 }
0x1696   :  { %976 = vst.msk [vmem:[%s1513_s6 + $0x38] sm:$0xff] %vm968_vm2, %v967_v9 }

</bundles_post_ra>
